<compile_context>
chip_gen: v5e
topology: v5e:2x2
jax: 0.10.0
libtpu: 0.0.40
codegen_flags: <defaults>
</compile_context>

<pallas_src>
import functools

import jax
import jax.numpy as jnp
from jax.experimental import pallas as pl
from jax.experimental.pallas import tpu as pltpu

LANE = 128            # TPU lane width
SUBLANE = 8           # f32 sublane count
MAX_BATCH_TILE = 128  # rows per grid step


def _round_up(n, m):
    return ((n + m - 1) // m) * m


def haint_lstm_kernel(x_ref, w_gates_ref, w_fc_ref, out_ref, *, hidden_dim):
    """One batch tile of the single-step HAINT_LSTM forward.

    x_ref       (TM, D+1)   f32, last column is a constant 1 (gate-bias carrier)
    w_gates_ref (D+1, 3*GP) bf16, columns [i | o | g], each gate 128-lane
                            aligned, last K-row = fused LSTM bias (b_ih + b_hh)
    w_fc_ref    (GP, O_pad) bf16, rows 0..H-1 = fc weight, row H = fc bias,
                            remaining rows/lanes zero
    out_ref     (TM, O_pad) f32 lane-padded output slab
    """
    gp = w_gates_ref.shape[1] // 3            # per-gate lane-padded width (>= H)

    # ---- fused gate matmul (LSTM bias folded in via the constant-1 column) ----
    x = x_ref[...].astype(jnp.bfloat16)
    gates = jnp.dot(x, w_gates_ref[...],
                    preferred_element_type=jnp.float32)          # (TM, 3*GP) f32

    # [i | o | g] packing: one sigmoid over the contiguous i|o slab, one tanh
    # over g; every slice starts on a 128-lane boundary.
    sig = jax.nn.sigmoid(gates[:, 0:2 * gp])
    i_gate = sig[:, 0:gp]
    o_gate = sig[:, gp:2 * gp]
    g_gate = jnp.tanh(gates[:, 2 * gp:3 * gp])

    c = i_gate * g_gate                       # f * c0 == 0 since c0 == 0
    h = o_gate * jnp.tanh(c)                  # (TM, GP); padded lanes >= H are 0

    # spatial attention, dropout1, temporal attention, dropout2:
    # identity for a length-1 sequence in eval mode -> use h directly.

    # ---- fc projection; bias folded into w_fc row H via a constant-1 lane ----
    lane = jax.lax.broadcasted_iota(jnp.int32, h.shape, 1)
    h_aug = jnp.where(lane == hidden_dim, 1.0, h).astype(jnp.bfloat16)
    out_ref[...] = jnp.dot(h_aug, w_fc_ref[...],
                           preferred_element_type=jnp.float32)   # (TM, O_pad)


def haint_lstm_forward(x, params):
    B, D = x.shape
    H = params["hidden_dim"]
    O = params["output_dim"]
    w_gates = params["w_gates"]               # (D+1, 3*GP) bf16
    w_fc = params["w_fc"]                     # (GP, O_pad) bf16
    o_pad = w_fc.shape[1]

    # Fold the fused LSTM bias into the gate matmul: constant-1 column on x.
    x_aug = jnp.concatenate([x, jnp.ones((B, 1), x.dtype)], axis=1)  # (B, D+1)

    # Batch tiling: tile is a multiple of the f32 sublane count; pad explicitly
    # so every store is a full tile (no masked partial-sublane vst).
    tm = min(MAX_BATCH_TILE, _round_up(B, SUBLANE))
    grid = (pl.cdiv(B, tm),)
    b_pad = grid[0] * tm
    if b_pad != B:
        x_aug = jnp.pad(x_aug, ((0, b_pad - B), (0, 0)))

    kernel = functools.partial(haint_lstm_kernel, hidden_dim=H)
    out_padded = pl.pallas_call(
        kernel,
        out_shape=jax.ShapeDtypeStruct((b_pad, o_pad), jnp.float32),
        grid=grid,
        in_specs=[
            pl.BlockSpec((tm, D + 1), lambda i: (i, 0)),
            pl.BlockSpec(w_gates.shape, lambda i: (0, 0)),  # resident across tiles
            pl.BlockSpec(w_fc.shape, lambda i: (0, 0)),
        ],
        out_specs=pl.BlockSpec((tm, o_pad), lambda i: (i, 0)),
        compiler_params=pltpu.CompilerParams(
            dimension_semantics=("parallel",)),   # batch tiles shard across TCs (v7x)
    )(x_aug, w_gates, w_fc)
    return out_padded[:B, :O]


def init_params(key, input_dim, hidden_dim, output_dim):
    """Mirror PyTorch parameter shapes/init (uniform +-1/sqrt(H)), then fuse and
    pack them for the kernel.  Also returns the raw f32 params for a pure-JAX
    reference check."""
    H, D, O = hidden_dim, input_dim, output_dim
    scale = 1.0 / (H ** 0.5)
    ks = jax.random.split(key, 10)

    def u(k, shape):
        return jax.random.uniform(k, shape, jnp.float32, -scale, scale)

    # nn.LSTM: weight_ih_l0 (4H, D), weight_hh_l0 (4H, H), bias_ih/_hh (4H,);
    # PyTorch gate order [i, f, g, o].  weight_hh multiplies h0 == 0 and the
    # forget gate multiplies c0 == 0, so both are dropped.
    w_ih = u(ks[0], (4 * H, D))
    _w_hh = u(ks[1], (4 * H, H))                       # dead: h0 == 0
    b = u(ks[2], (4 * H,)) + u(ks[3], (4 * H,))        # b_ih + b_hh pre-summed
    w_ii, w_ig, w_io = w_ih[0:H], w_ih[2 * H:3 * H], w_ih[3 * H:4 * H]
    b_i, b_g, b_o = b[0:H], b[2 * H:3 * H], b[3 * H:4 * H]

    # SpatialAttention / TemporalAttention Linear(H, 1) params: sampled only to
    # mirror the module's parameter count; attention over a length-1 sequence
    # is the identity, so they never enter the kernel.
    _ = u(ks[4], (1, H)); _ = u(ks[5], (1,))
    _ = u(ks[6], (1, H)); _ = u(ks[7], (1,))

    # fc: Linear(H, O)
    w_fc_raw = u(ks[8], (O, H))
    b_fc_raw = u(ks[9], (O,))

    # ---- packing for the kernel ----
    gp = _round_up(H, LANE)
    if gp == H:            # need a spare fc K-row to carry the fc bias
        gp += LANE
    o_pad = _round_up(O, LANE)

    # Fused gate weight (D+1, 3*GP): columns [i | o | g], each 128-lane aligned;
    # last K-row = fused bias (hit by the constant-1 column appended to x).
    w_gates = jnp.zeros((D + 1, 3 * gp), jnp.float32)
    w_gates = w_gates.at[:D, 0 * gp:0 * gp + H].set(w_ii.T)
    w_gates = w_gates.at[:D, 1 * gp:1 * gp + H].set(w_io.T)
    w_gates = w_gates.at[:D, 2 * gp:2 * gp + H].set(w_ig.T)
    w_gates = w_gates.at[D, 0 * gp:0 * gp + H].set(b_i)
    w_gates = w_gates.at[D, 1 * gp:1 * gp + H].set(b_o)
    w_gates = w_gates.at[D, 2 * gp:2 * gp + H].set(b_g)

    # fc weight (GP, O_pad): rows 0..H-1 = W^T, row H = bias (hit by the
    # constant-1 planted in lane H of h); padded rows/lanes stay zero so the
    # sliced-off output lanes are inert.
    w_fc = jnp.zeros((gp, o_pad), jnp.float32)
    w_fc = w_fc.at[:H, :O].set(w_fc_raw.T)
    w_fc = w_fc.at[H, :O].set(b_fc_raw)

    return dict(
        w_gates=w_gates.astype(jnp.bfloat16),
        w_fc=w_fc.astype(jnp.bfloat16),
        hidden_dim=H, output_dim=O,
        ref=dict(w_ii=w_ii, w_ig=w_ig, w_io=w_io, b_i=b_i, b_g=b_g, b_o=b_o,
                 w_fc=w_fc_raw, b_fc=b_fc_raw),
    )


def reference_forward(x, ref):
    """Pure-JAX f32 reference of the PyTorch forward (single step, eval mode)."""
    i = jax.nn.sigmoid(x @ ref["w_ii"].T + ref["b_i"])
    g = jnp.tanh(x @ ref["w_ig"].T + ref["b_g"])
    o = jax.nn.sigmoid(x @ ref["w_io"].T + ref["b_o"])
    h = o * jnp.tanh(i * g)                   # h0 == c0 == 0
    return h @ ref["w_fc"].T + ref["b_fc"]    # attention/dropout are identity


if __name__ == "__main__":
    B, D, H, O = 8, 16, 32, 8
    key = jax.random.PRNGKey(0)
    kx, kp = jax.random.split(key)
    x = jax.random.normal(kx, (B, D), jnp.float32)
    params = init_params(kp, D, H, O)

    out = jax.block_until_ready(haint_lstm_forward(x, params))
    assert out.shape == (B, O) and out.dtype == jnp.float32

    ref_out = reference_forward(x, params["ref"])
    err = float(jnp.max(jnp.abs(out - ref_out)))
    assert err < 5e-2, f"max |err| = {err}"   # bf16-MXU tolerance, f32 accumulate
    print("KERNEL_OK")
</pallas_src>

<mosaic_0001>
module attributes {stable_mosaic.version = 11 : i64} {
  func.func @haint_lstm_kernel(%arg0: i32, %arg1: memref<8x17xf32, #tpu.memory_space<vmem>>, %arg2: memref<17x384xbf16, #tpu.memory_space<vmem>>, %arg3: memref<128x128xbf16, #tpu.memory_space<vmem>>, %arg4: memref<8x128xf32, #tpu.memory_space<vmem>>) attributes {dimension_semantics = [#tpu.dimension_semantics<parallel>], iteration_bounds = array<i64: 1>, scalar_prefetch = 0 : i64, scratch_operands = 0 : i64, tpu.core_type = #tpu.core_type<tc>, window_params = [{transform_indices = @transform_0, window_bounds = array<i64: 8, 17>}, {pipeline_mode = #tpu.pipeline_mode<synchronous>, transform_indices = @transform_1, window_bounds = array<i64: 17, 384>}, {pipeline_mode = #tpu.pipeline_mode<synchronous>, transform_indices = @transform_2, window_bounds = array<i64: 128, 128>}, {transform_indices = @transform_3, window_bounds = array<i64: 8, 128>}]} {
    %c0 = arith.constant 0 : index
    %c0_0 = arith.constant 0 : index
    %0 = vector.load %arg1[%c0, %c0_0] : memref<8x17xf32, #tpu.memory_space<vmem>>, vector<8x17xf32>
    %1 = arith.truncf %0 : vector<8x17xf32> to vector<8x17xbf16>
    %c0_1 = arith.constant 0 : index
    %c0_2 = arith.constant 0 : index
    %2 = vector.load %arg2[%c0_1, %c0_2] : memref<17x384xbf16, #tpu.memory_space<vmem>>, vector<17x384xbf16>
    %cst = arith.constant dense<0.000000e+00> : vector<8x384xf32>
    %3 = tpu.matmul %1, %2, %cst {dimension_numbers = #tpu.dot_dimension_numbers<[1], [0], [0], [1], [0, 0, 1, 1], [], []>} : vector<8x17xbf16>, vector<17x384xbf16>, vector<8x384xf32> -> vector<8x384xf32>
    %4 = vector.extract_strided_slice %3 {offsets = [0, 0], sizes = [8, 256], strides = [1, 1]} : vector<8x384xf32> to vector<8x256xf32>
    %5 = arith.negf %4 : vector<8x256xf32>
    %6 = math.exp %5 : vector<8x256xf32>
    %cst_3 = arith.constant 1.000000e+00 : f32
    %7 = vector.broadcast %cst_3 : f32 to vector<8x256xf32>
    %8 = arith.addf %7, %6 : vector<8x256xf32>
    %9 = arith.divf %7, %8 : vector<8x256xf32>
    %10 = vector.extract_strided_slice %9 {offsets = [0, 0], sizes = [8, 128], strides = [1, 1]} : vector<8x256xf32> to vector<8x128xf32>
    %11 = vector.extract_strided_slice %9 {offsets = [0, 128], sizes = [8, 128], strides = [1, 1]} : vector<8x256xf32> to vector<8x128xf32>
    %12 = vector.extract_strided_slice %3 {offsets = [0, 256], sizes = [8, 128], strides = [1, 1]} : vector<8x384xf32> to vector<8x128xf32>
    %13 = math.tanh %12 : vector<8x128xf32>
    %14 = arith.mulf %10, %13 : vector<8x128xf32>
    %15 = math.tanh %14 : vector<8x128xf32>
    %16 = arith.mulf %11, %15 : vector<8x128xf32>
    %17 = tpu.iota {dimensions = array<i32: 1>} : vector<8x128xi32>
    %c32_i32 = arith.constant 32 : i32
    %18 = vector.broadcast %c32_i32 : i32 to vector<8x128xi32>
    %19 = arith.cmpi eq, %17, %18 : vector<8x128xi32>
    %cst_4 = arith.constant 1.000000e+00 : f32
    %20 = vector.broadcast %cst_4 : f32 to vector<8x128xf32>
    %21 = arith.select %19, %20, %16 : vector<8x128xi1>, vector<8x128xf32>
    %22 = arith.truncf %21 : vector<8x128xf32> to vector<8x128xbf16>
    %c0_5 = arith.constant 0 : index
    %c0_6 = arith.constant 0 : index
    %23 = vector.load %arg3[%c0_5, %c0_6] : memref<128x128xbf16, #tpu.memory_space<vmem>>, vector<128x128xbf16>
    %cst_7 = arith.constant dense<0.000000e+00> : vector<8x128xf32>
    %24 = tpu.matmul %22, %23, %cst_7 {dimension_numbers = #tpu.dot_dimension_numbers<[1], [0], [0], [1], [0, 0, 1, 1], [], []>} : vector<8x128xbf16>, vector<128x128xbf16>, vector<8x128xf32> -> vector<8x128xf32>
    %c0_8 = arith.constant 0 : index
    %c0_9 = arith.constant 0 : index
    %25 = vector.load %arg4[%c0_8, %c0_9] : memref<8x128xf32, #tpu.memory_space<vmem>>, vector<8x128xf32>
    tpu.vector_store %arg4[%c0_8, %c0_9], %24 {strides = array<i32>} : memref<8x128xf32, #tpu.memory_space<vmem>>, vector<8x128xf32>,
    return
  }
  func.func @transform_0(%arg0: i32) -> (i32, i32) {
    %c0_i32 = arith.constant 0 : i32
    %c0_i32_0 = arith.constant 0 : i32
    return %arg0, %c0_i32 : i32, i32
  }
  func.func @transform_1(%arg0: i32) -> (i32, i32) {
    %c0_i32 = arith.constant 0 : i32
    %c0_i32_0 = arith.constant 0 : i32
    %c0_i32_1 = arith.constant 0 : i32
    return %c0_i32, %c0_i32_0 : i32, i32
  }
  func.func @transform_2(%arg0: i32) -> (i32, i32) {
    %c0_i32 = arith.constant 0 : i32
    %c0_i32_0 = arith.constant 0 : i32
    %c0_i32_1 = arith.constant 0 : i32
    return %c0_i32, %c0_i32_0 : i32, i32
  }
  func.func @transform_3(%arg0: i32) -> (i32, i32) {
    %c0_i32 = arith.constant 0 : i32
    %c0_i32_0 = arith.constant 0 : i32
    return %arg0, %c0_i32 : i32, i32
  }
}

</mosaic_0001>

<bundles_post_ra>
// kernel: tpu_custom_call.1
= control target key start
LH: loop header
LB: loop body
LE: loop exit
PB: predicated region body
PF: predicated region fallthrough
CT: control target
= control target key end

     0   :  { %8 = vsyncpa [#allocation3], 0  ;;  %s515_s0 = inlined_call_operand.hbm [shape: f32[8,17], index: 0, kind: input, shape index: {}]   ;;  %s516_s1 = inlined_call_operand.hbm [shape: bf16[17,384], index: 1, kind: input, shape index: {}]   ;;  %s517_s2 = inlined_call_operand.hbm [shape: bf16[128,128], index: 2, kind: input, shape index: {}]   ;;  %s518_s3 = inlined_call_operand.hbm [shape: f32[8,128], index: 3, kind: output, shape index: {}]  }
   0x1   :  { %9 = vsyncpa [#allocation6], 0  ;;  %s26_s14 = sshll.u32 %s516_s1, 4  ;;  %s27_s14 = int_to_ptr.hbm [resolvable:$true] %s26_s14 }
   0x2   :  { %10 = vsyncpa [#allocation4], 0  ;;  %s474_s15 = smov [#allocation5]   ;;  %s16_s19 = sshll.u32 %s515_s0, 4  ;;  %s17_s19 = int_to_ptr.hbm [resolvable:$true] %s16_s19 }
   0x3   :  { %s28_s16 = sshll.u32 %s474_s15, 4  ;;  %s475_s20 = smov 192   ;;  %s29_s16 = int_to_ptr.vmem [resolvable:$true] %s28_s16 }
   0x4   :  { %s476_s21 = smov 12   ;;  %s477_s22 = smov [#allocation2]  }
   0x5   :  { %34 = dma.hbm_to_vmem [thread:$0]  %s27_s14, 576, %s29_s16, [#allocation6], %s475_s20, %s475_s20, %s476_s21  }
   0x6   :  { %s18_s23 = sshll.u32 %s477_s22, 4  ;;  %s39_s26 = sshll.u32 %s517_s2, 4  ;;  %s19_s23 = int_to_ptr.vmem [resolvable:$true] %s18_s23  ;;  %s40_s26 = int_to_ptr.hbm [resolvable:$true] %s39_s26 }
   0x7   :  { %21 = dma.hbm_to_vmem [thread:$0]  %s17_s19, 128, %s19_s23, [#allocation3]  }
   0x8   :  { %s478_s1 = smov [#allocation7]   ;;  %s479_s28 = smov 64  }
   0x9   :  { %s41_s27 = sshll.u32 %s478_s1, 4  ;;  %s480_s29 = smov 4   ;;  %s42_s27 = int_to_ptr.vmem [resolvable:$true] %s41_s27 }
   0xa   :  { %47 = dma.hbm_to_vmem [thread:$0]  %s40_s26, 1024, %s42_s27, [#allocation6], %s479_s28, %s479_s28, %s480_s29  }
   0xb   :  { %468 = dma.done.wait [#allocation3], 128  }
   0xc   :  { %469 = vsyncadd [#allocation3], 4294967168 }
   0xd   :  { %470 = dma.done.wait [#allocation6], 1600  }
   0xe   :  { %471 = vsyncadd [#allocation6], 4294965696  ;;  %vm97_vm0 = vcmask 1040384   ;;  %v67_v0 = vld [vmem:[#allocation5 + $0x18] sm:$0x11]  ;;  %v481_v3 = vmov 0   ;;  %v190_v60 = vlaneseq }
   0xf   :  { %v81_v1 = vunpack.c.l.b16 %v67_v0  ;;  %v82_v2 = vunpack.c.h.b16 %v67_v0  ;;  %v99_v4 = vsel %vm97_vm0, 65535, %v481_v3  ;;  %v68_v5 = vld [vmem:[#allocation5 + $0x20] sm:$0x1]  ;;  %v341_v10 = vld [vmem:[#allocation5 + $0x8] sm:$0xf0]  ;;  %v61_v20 = vld [vmem:[#allocation2] sm:$0xff] }
  0x10   :  { %v293_v8 = vld [vmem:[#allocation5] sm:$0xf]  ;;  %v83_v9 = vunpack.c.l.b16 %v68_v5  ;;  %v340_v11 = vld [vmem:[#allocation5 + $0x4] sm:$0xf]  ;;  %v295_v12 = vld [vmem:[#allocation5 + $0xc] sm:$0xf0]  ;;  %v62_v23 = vpack.c.bf16 %v61_v20, %v61_v20 }
  0x11   :  { %v87_v6 = vpack.c.b16 %v81_v1, %v81_v1  ;;  %v88_v7 = vpack.c.b16 %v82_v2, %v82_v2  ;;  %v301_v16 = vld [vmem:[#allocation5 + $0x8] sm:$0xf]  ;;  %v342_v17 = vld [vmem:[#allocation5 + $0x10] sm:$0xf0]  ;;  %v294_v18 = vor.u32 %v341_v10, %v293_v8  ;;  %v298_v19 = vor.u32 %v340_v11, %v295_v12  ;;  %v350_v24 = vld [vmem:[#allocation7 + $0x38] sm:$0xff]  ;;  %s482_s0 = smov [#allocation8]  }
  0x12   :  { %v89_v15 = vpack.c.b16 %v83_v9, %v83_v9  ;;  %v302_v22 = vor.u32 %v342_v17, %v301_v16  ;;  %vm93_vm1 = vcmask 138240   ;;  %259 = vmatpush.bf16.msra.mxu3 %v350_v24  ;;  %v349_v25 = vld [vmem:[#allocation7 + $0x30] sm:$0xff]  ;;  %v348_v26 = vld [vmem:[#allocation7 + $0x28] sm:$0xff]  ;;  %v347_v27 = vld [vmem:[#allocation7 + $0x20] sm:$0xff]  ;;  %v191_v0 = vand.u32 127, %v190_v60  ;;  %s278_s2 = sshll.u32 %s482_s0, 4  ;;  %s279_s2 = int_to_ptr.vmem [resolvable:$true] %s278_s2 }
  0x13   :  { %v101_v13 = vand.u32 %v99_v4, %v87_v6  ;;  %v104_v14 = vand.u32 %v99_v4, %v88_v7  ;;  %v346_v28 = vld [vmem:[#allocation7 + $0x18] sm:$0xff]  ;;  %v345_v29 = vld [vmem:[#allocation7 + $0x10] sm:$0xff]  ;;  %v344_v34 = vld [vmem:[#allocation7 + $0x8] sm:$0xff]  ;;  %s280_s5 = sshll.u32 %s518_s3, 4  ;;  %s281_s5 = int_to_ptr.hbm [resolvable:$true] %s280_s5 }
  0x14   :  { %v107_v21 = vand.u32 %v99_v4, %v89_v15  ;;  %v343_v35 = vld [vmem:[#allocation7] sm:$0xff]  ;;  %vm192_vm10 = vcmp.eq.s32.totalorder %v191_v0, 32 }
  0x15   :  { %115 = vmatpush.bf16.msra.mxu0 %v101_v13  ;;  %128 = vmatpush.bf16.msra.mxu1 %v104_v14 }
  0x16   :  { %141 = vmatpush.bf16.msra.mxu2 %v107_v21  ;;  %260 = vmatpush.bf16.msra.mxu3 %v349_v25 }
  0x19   :  { %116 = vmatpush.bf16.msra.mxu0 %v294_v18  ;;  %129 = vmatpush.bf16.msra.mxu1 %v298_v19 }
  0x1a   :  { %142 = vmatpush.bf16.msra.mxu2 %v302_v22  ;;  %261 = vmatpush.bf16.msra.mxu3 %v348_v26 }
  0x1c   :  { %303 = vmatmul.msk.bf16.vlgmr.msra.gmra.mxu0 %vm93_vm1, %v62_v23  ;;  %304 = vmatmul.msk.bf16.vlgmr.msra.gmra.mxu1 %vm93_vm1, %v62_v23 }
  0x1d   :  { %305 = vmatmul.msk.bf16.vlgmr.msra.gmra.mxu2 %vm93_vm1, %v62_v23 }
  0x1e   :  { %262 = vmatpush.bf16.msra.mxu3 %v347_v27 }
  0x22   :  { %263 = vmatpush.bf16.msra.mxu3 %v346_v28 }
  0x26   :  { %264 = vmatpush.bf16.msra.mxu3 %v345_v29 }
  0x2a   :  { %265 = vmatpush.bf16.msra.mxu3 %v344_v34 }
  0x2e   :  { %266 = vmatpush.bf16.msra.mxu3 %v343_v35 }
  0x99   :  { %v118_v30 = vpop.f32.mrf.mxu0  ;;  %v131_v31 = vpop.f32.mrf.mxu1 }
  0x9a   :  { %v306_v32 = vmul.f32 -1.442695, %v118_v30  ;;  %v307_v33 = vmul.f32 -1.442695, %v131_v31 }
  0x9c   :  { %360 = vpow2.f32 %v306_v32 }
  0x9d   :  { %362 = vpow2.f32 %v307_v33 }
  0xa0   :  { %v144_v39 = vpop.f32.mrf.mxu2 }
  0xa1   :  { %v120_v36 = vpop.f32.mrf.mxu0  ;;  %v133_v37 = vpop.f32.mrf.mxu1 }
  0xa2   :  { %v361_v38 = vpop.eup %360 }
  0xa3   :  { %v363_v40 = vpop.eup %362  ;;  %v154_v41 = vadd.f32 1.0, %v361_v38 }
  0xa4   :  { %v155_v42 = vadd.f32 1.0, %v363_v40 }
  0xa5   :  { %364 = vrcp.f32 %v154_v41  ;;  %v167_v49 = vand.u32 2147483648, %v154_v41  ;;  %v165_v52 = vand.u32 2147483647, %v154_v41  ;;  %vm161_vm3 = vweird.f32 %v154_v41 }
  0xa6   :  { %366 = vrcp.f32 %v155_v42  ;;  %vm176_vm6 = vweird.f32 %v155_v42  ;;  %v182_v62 = vand.u32 2147483648, %v155_v42  ;;  %v180_v63 = vand.u32 2147483647, %v155_v42 }
  0xa7   :  { %368 = vtanh.f32 %v144_v39  ;;  %v168_v55 = vor.u32 1.1754944e-38, %v167_v49  ;;  %vm166_vm5 = vcmp.eq.f32.partialorder %v165_v52, 8.507059e+37 }
  0xa8   :  { %v146_v43 = vpop.f32.mrf.mxu2  ;;  %v183_v2 = vor.u32 1.1754944e-38, %v182_v62  ;;  %vm181_vm9 = vcmp.eq.f32.partialorder %v180_v63, 8.507059e+37 }
  0xab   :  { %v365_v44 = vpop.eup %364 }
  0xac   :  { %v367_v45 = vpop.eup %366  ;;  %v157_v46 = vmul.f32 %v365_v44, %v154_v41  ;;  %vm162_vm2 = vweird.f32 %v365_v44 }
  0xad   :  { %v172_v47 = vmul.f32 %v367_v45, %v155_v42  ;;  %v369_v54 = vpop.eup %368  ;;  %vm163_vm4 = vmor %vm161_vm3, %vm162_vm2  ;;  %vm177_vm7 = vweird.f32 %v367_v45 }
  0xae   :  { %v158_v48 = vsub.f32 1.0, %v157_v46  ;;  %vm178_vm8 = vmor %vm176_vm6, %vm177_vm7 }
  0xaf   :  { %v173_v50 = vsub.f32 1.0, %v172_v47 }
  0xb0   :  { %v159_v51 = vmul.f32 %v365_v44, %v158_v48 }
  0xb1   :  { %v174_v56 = vmul.f32 %v367_v45, %v173_v50 }
  0xb2   :  { %v160_v53 = vadd.f32 %v365_v44, %v159_v51 }
  0xb3   :  { %v175_v61 = vadd.f32 %v367_v45, %v174_v56 }
  0xb4   :  { %v164_v57 = vsel %vm163_vm4, %v365_v44, %v160_v53 }
  0xb5   :  { %v169_v58 = vsel %vm166_vm5, %v168_v55, %v164_v57  ;;  %v179_v1 = vsel %vm178_vm8, %v367_v45, %v175_v61 }
  0xb6   :  { %v187_v59 = vmul.f32 %v369_v54, %v169_v58  ;;  %v184_v4 = vsel %vm181_vm9, %v183_v2, %v179_v1 }
  0xb8   :  { %370 = vtanh.f32 %v187_v59 }
  0xbe   :  { %v371_v3 = vpop.eup %370 }
  0xbf   :  { %v189_v5 = vmul.f32 %v371_v3, %v184_v4 }
  0xc1   :  { %v193_v6 = vsel %vm192_vm10, 1.0, %v189_v5 }
  0xc2   :  { %v194_v7 = vpack.c.bf16 %v193_v6, %v193_v6 }
  0xc4   :  { %267 = vmatmul.bf16.vlgmr.msra.gmra.mxu3 %v194_v7 }
 0x147   :  { %v268_v8 = vpop.f32.mrf.mxu3 }
 0x148   :  { %272 = vst [vmem:[#allocation8] sm:$0xff] %v268_v8 }
 0x149   :  { %283 = dma.vmem_to_hbm [thread:$0]  %s279_s2, 128, %s281_s5, [#allocation4]  }
 0x14f   :  { %v270_v9 = vpop.f32.mrf.mxu3 }
 0x150   :  { %472 = dma.done.wait [#allocation4], 128  }
 0x151   :  { %473 = vsyncadd [#allocation4], 4294967168 }
 0x152   :  { %288 = vsyncpa [#allocation3], 1 }
 0x153   :  { %289 = vsyncpa [#allocation6], 1 }
 0x154   :  { %290 = vsyncpa [#allocation4], 1 }

</bundles_post_ra>
